<compile_context>
chip_gen: v7x
topology: tpu7x:2x2x1
jax: 0.10.0
libtpu: 0.0.40
codegen_flags: <defaults>
</compile_context>

<pallas_src>
import functools

import jax
import jax.numpy as jnp
from jax import lax
from jax.experimental import pallas as pl
from jax.experimental.pallas import tpu as pltpu


_NCORES = 2  # leading "parallel" grid axis; shards the k-reduction across TCs on v7x


def _round_up(x: int, m: int) -> int:
    return ((x + m - 1) // m) * m


def _gram_partial_kernel(x_ref, y_ref, out_ref, *, b: int, tk: int,
                         nk_half: int, two_matmul: bool):
    """Accumulate one core's partial M matrix over its half of the k-tiles.

    one-matmul path (f32):      M_p = sum_k (X_k + Y_k)(X_k - Y_k)^T
    two-matmul path (bf16/...): M_p = sum_k X_k X_k^T - Y_k Y_k^T
    """
    p = pl.program_id(0)
    k = pl.program_id(1)

    @pl.when(k == 0)
    def _init():
        out_ref[...] = jnp.zeros_like(out_ref)

    x = x_ref[...]  # native dtype -> native-rate MXU with f32 accumulation
    y = y_ref[...]

    # Mask the ragged last k-tile (and fully idle steps of an uneven 2-way split):
    # column j of this tile is feature index g*tk + j; anything >= b contributes 0.
    g = p * nk_half + k
    col = lax.broadcasted_iota(jnp.int32, x.shape, 1)
    valid = col < (b - g * tk)
    x = jnp.where(valid, x, jnp.zeros_like(x))
    y = jnp.where(valid, y, jnp.zeros_like(y))

    # Contract the feature axis of BOTH operands directly (no .T / relayout).
    dn = (((1,), (1,)), ((), ()))
    if two_matmul:
        part = lax.dot_general(x, x, dn, preferred_element_type=jnp.float32)
        part = part - lax.dot_general(y, y, dn, preferred_element_type=jnp.float32)
    else:
        part = lax.dot_general(x + y, x - y, dn, preferred_element_type=jnp.float32)

    out_ref[...] += part[None, :, :]


def gram_style_loss(generate_feature: jax.Array,
                    target_feature: jax.Array,
                    *,
                    tk: int | None = None) -> jax.Array:
    """Pallas equivalent of GramStyleLoss.forward. Inputs: 2-D (a, b) arrays."""
    assert generate_feature.shape == target_feature.shape
    assert generate_feature.ndim == 2
    assert generate_feature.dtype == target_feature.dtype

    a, b = generate_feature.shape
    dtype = generate_feature.dtype
    itemsize = jnp.dtype(dtype).itemsize
    # bf16/fp8/int8: two native-rate matmuls (no x+-y VPU upcast on v5e, no extra rounding)
    two_matmul = itemsize < 4

    # --- k-tile sizing -------------------------------------------------------------
    # Scoped VMEM usage = 2 inputs x 2 pipeline buffers x (a, tk) tiles
    #                   + double-buffered (1, a, a) f32 output accumulator.
    total_budget = 32 * 1024 * 1024          # fits every generation incl. v7x (64 MiB phys)
    acc_bytes = 2 * a * a * 4
    in_budget = total_budget - acc_bytes
    if in_budget < 2 * 1024 * 1024:
        in_budget = 2 * 1024 * 1024          # see TODO(synk) above for very large `a`
    if tk is None:
        tk = in_budget // (4 * a * itemsize)
        # keep >= ~4 pipelined k-steps per core so DMA still overlaps compute
        tk = min(tk, max(128, _round_up(pl.cdiv(b, 4 * _NCORES), 128)))
    tk = max(128, (tk // 128) * 128)
    tk = min(tk, _round_up(b, 128))

    nk = pl.cdiv(b, tk)              # number of real k-tiles
    nk_half = pl.cdiv(nk, _NCORES)   # k-tiles per core (trailing steps may be masked idle)

    def in_map(p, k):
        g = p * nk_half + k
        # Clamp so the DMA of idle trailing steps stays in bounds (their data is masked).
        return (0, jnp.minimum(g, nk - 1))

    vmem_limit = 4 * a * tk * itemsize + acc_bytes + 4 * 1024 * 1024
    vmem_limit = int(min(max(vmem_limit, 16 * 1024 * 1024), 100 * 1024 * 1024))

    kernel = functools.partial(_gram_partial_kernel, b=b, tk=tk,
                               nk_half=nk_half, two_matmul=two_matmul)

    partial_m = pl.pallas_call(
        kernel,
        out_shape=jax.ShapeDtypeStruct((_NCORES, a, a), jnp.float32),
        grid_spec=pltpu.PrefetchScalarGridSpec(
            num_scalar_prefetch=0,
            grid=(_NCORES, nk_half),
            in_specs=[
                pl.BlockSpec((a, tk), in_map),
                pl.BlockSpec((a, tk), in_map),
            ],
            out_specs=pl.BlockSpec((1, a, a), lambda p, k: (p, 0, 0)),
        ),
        compiler_params=pltpu.CompilerParams(
            dimension_semantics=("parallel", "arbitrary"),  # split k across TCs; k reduces
            vmem_limit_bytes=vmem_limit,
        ),
    )(generate_feature, target_feature)

    # Tiny epilogue on the two (a, a) partials in plain JAX; every scalar factor
    # (Gram 1/(a*b), the 0.5 symmetrize, MSE 1/(a*a)) is folded into one multiply.
    m = partial_m[0] + partial_m[1]
    if two_matmul:
        d = m                         # already X X^T - Y Y^T
        s = 1.0 / float(a * b)
    else:
        d = m + m.T                   # = 2 * (X X^T - Y Y^T)
        s = 0.5 / float(a * b)
    return jnp.sum(d * d) * (s * s / float(a * a))


if __name__ == "__main__":
    key = jax.random.PRNGKey(0)
    k1, k2 = jax.random.split(key)

    # Small, deliberately unaligned shapes: channels a=20, features b=500.
    # Auto-tiling gives tk=128 -> 4 real k-tiles split across the 2-way parallel axis,
    # with a ragged (116-column) last tile exercising the in-kernel mask (no jnp.pad).
    a, b = 20, 500
    x = jax.random.normal(k1, (a, b), dtype=jnp.float32)
    y = jax.random.normal(k2, (a, b), dtype=jnp.float32)

    def _ref(xx, yy):
        xx = xx.astype(jnp.float32)
        yy = yy.astype(jnp.float32)
        gx = (xx @ xx.T) / (a * b)
        gy = (yy @ yy.T) / (a * b)
        return jnp.mean((gx - gy) ** 2)

    # f32 path: one-matmul (X+Y)(X-Y)^T formulation.
    loss = gram_style_loss(x, y)
    jax.block_until_ready(loss)
    ref = _ref(x, y)
    assert jnp.allclose(loss, ref, rtol=1e-4, atol=1e-8), (loss, ref)

    # bf16 path: two native-rate matmuls with f32 accumulation.
    xb = x.astype(jnp.bfloat16)
    yb = y.astype(jnp.bfloat16)
    loss_bf16 = gram_style_loss(xb, yb)
    jax.block_until_ready(loss_bf16)
    ref_bf16 = _ref(xb, yb)
    assert jnp.allclose(loss_bf16, ref_bf16, rtol=5e-3, atol=1e-7), (loss_bf16, ref_bf16)

    print("KERNEL_OK")
</pallas_src>

<mosaic_0001>
module attributes {stable_mosaic.version = 11 : i64} {
  func.func @_gram_partial_kernel(%arg0: i32, %arg1: i32, %arg2: memref<20x128xf32, #tpu.memory_space<vmem>>, %arg3: memref<20x128xf32, #tpu.memory_space<vmem>>, %arg4: memref<1x20x20xf32, #tpu.memory_space<vmem>>) attributes {dimension_semantics = [#tpu.dimension_semantics<parallel>, #tpu.dimension_semantics<arbitrary>], iteration_bounds = array<i64: 2, 2>, scalar_prefetch = 0 : i64, scratch_operands = 0 : i64, tpu.core_type = #tpu.core_type<tc>, window_params = [{transform_indices = @transform_0, window_bounds = array<i64: 20, 128>}, {transform_indices = @transform_1, window_bounds = array<i64: 20, 128>}, {transform_indices = @transform_2, window_bounds = array<i64: 1, 20, 20>}]} {
    %c0_i32 = arith.constant 0 : i32
    %0 = arith.cmpi eq, %arg1, %c0_i32 : i32
    %1 = arith.extui %0 : i1 to i32
    %c0_i32_0 = arith.constant 0 : i32
    %2 = arith.cmpi ne, %1, %c0_i32_0 : i32
    scf.if %2 {
      %cst_12 = arith.constant 0.000000e+00 : f32
      %23 = vector.broadcast %cst_12 : f32 to vector<1x20x20xf32>
      %c0_13 = arith.constant 0 : index
      %c0_14 = arith.constant 0 : index
      %c0_15 = arith.constant 0 : index
      %24 = vector.load %arg4[%c0_13, %c0_14, %c0_15] : memref<1x20x20xf32, #tpu.memory_space<vmem>>, vector<1x20x20xf32>
      tpu.vector_store %arg4[%c0_13, %c0_14, %c0_15], %23 {strides = array<i32>} : memref<1x20x20xf32, #tpu.memory_space<vmem>>, vector<1x20x20xf32>,
    } else {
    }
    %c0 = arith.constant 0 : index
    %c0_1 = arith.constant 0 : index
    %3 = vector.load %arg2[%c0, %c0_1] : memref<20x128xf32, #tpu.memory_space<vmem>>, vector<20x128xf32>
    %c0_2 = arith.constant 0 : index
    %c0_3 = arith.constant 0 : index
    %4 = vector.load %arg3[%c0_2, %c0_3] : memref<20x128xf32, #tpu.memory_space<vmem>>, vector<20x128xf32>
    %c2_i32 = arith.constant 2 : i32
    %5 = arith.muli %arg0, %c2_i32 : i32
    %6 = arith.addi %5, %arg1 : i32
    %7 = tpu.iota {dimensions = array<i32: 1>} : vector<20x128xi32>
    %c128_i32 = arith.constant 128 : i32
    %8 = arith.muli %6, %c128_i32 : i32
    %c500_i32 = arith.constant 500 : i32
    %9 = arith.subi %c500_i32, %8 : i32
    %10 = vector.broadcast %9 : i32 to vector<20x128xi32>
    %11 = arith.cmpi slt, %7, %10 : vector<20x128xi32>
    %cst = arith.constant 0.000000e+00 : f32
    %12 = vector.broadcast %cst : f32 to vector<20x128xf32>
    %13 = arith.select %11, %3, %12 : vector<20x128xi1>, vector<20x128xf32>
    %cst_4 = arith.constant 0.000000e+00 : f32
    %14 = vector.broadcast %cst_4 : f32 to vector<20x128xf32>
    %15 = arith.select %11, %4, %14 : vector<20x128xi1>, vector<20x128xf32>
    %16 = arith.addf %13, %15 : vector<20x128xf32>
    %17 = arith.subf %13, %15 : vector<20x128xf32>
    %cst_5 = arith.constant dense<0.000000e+00> : vector<20x20xf32>
    %18 = tpu.matmul %16, %17, %cst_5 {dimension_numbers = #tpu.dot_dimension_numbers<[1], [1], [0], [0], [0, 0, 1, 0], [], []>} : vector<20x128xf32>, vector<20x128xf32>, vector<20x20xf32> -> vector<20x20xf32>
    %c0_6 = arith.constant 0 : index
    %c0_7 = arith.constant 0 : index
    %c0_8 = arith.constant 0 : index
    %19 = vector.load %arg4[%c0_6, %c0_7, %c0_8] : memref<1x20x20xf32, #tpu.memory_space<vmem>>, vector<1x20x20xf32>
    %20 = vector.shape_cast %18 : vector<20x20xf32> to vector<1x20x20xf32>
    %21 = arith.addf %19, %20 : vector<1x20x20xf32>
    %c0_9 = arith.constant 0 : index
    %c0_10 = arith.constant 0 : index
    %c0_11 = arith.constant 0 : index
    %22 = vector.load %arg4[%c0_9, %c0_10, %c0_11] : memref<1x20x20xf32, #tpu.memory_space<vmem>>, vector<1x20x20xf32>
    tpu.vector_store %arg4[%c0_9, %c0_10, %c0_11], %21 {strides = array<i32>} : memref<1x20x20xf32, #tpu.memory_space<vmem>>, vector<1x20x20xf32>,
    return
  }
  func.func @transform_0(%arg0: i32, %arg1: i32) -> (i32, i32) {
    %c2_i32 = arith.constant 2 : i32
    %0 = arith.muli %arg0, %c2_i32 : i32
    %1 = arith.addi %0, %arg1 : i32
    %c3_i32 = arith.constant 3 : i32
    %2 = arith.minsi %1, %c3_i32 : i32
    %c0_i32 = arith.constant 0 : i32
    %c0_i32_0 = arith.constant 0 : i32
    return %c0_i32, %2 : i32, i32
  }
  func.func @transform_1(%arg0: i32, %arg1: i32) -> (i32, i32) {
    %c2_i32 = arith.constant 2 : i32
    %0 = arith.muli %arg0, %c2_i32 : i32
    %1 = arith.addi %0, %arg1 : i32
    %c3_i32 = arith.constant 3 : i32
    %2 = arith.minsi %1, %c3_i32 : i32
    %c0_i32 = arith.constant 0 : i32
    %c0_i32_0 = arith.constant 0 : i32
    return %c0_i32, %2 : i32, i32
  }
  func.func @transform_2(%arg0: i32, %arg1: i32) -> (i32, i32, i32) {
    %c0_i32 = arith.constant 0 : i32
    %c0_i32_0 = arith.constant 0 : i32
    %c0_i32_1 = arith.constant 0 : i32
    return %arg0, %c0_i32, %c0_i32_0 : i32, i32, i32
  }
}

</mosaic_0001>

<bundles_post_ra>
// kernel: tpu_custom_call.1
= control target key start
LH: loop header
LB: loop body
LE: loop exit
PB: predicated region body
PF: predicated region fallthrough
CT: control target
= control target key end

     0   :  { %7 = vsyncpa [#allocation3], 0  ;;  %s1001_s0 = inlined_call_operand.hbm [shape: f32[20,500], index: 0, kind: input, shape index: {}]   ;;  %s1002_s1 = inlined_call_operand.hbm [shape: f32[20,500], index: 1, kind: input, shape index: {}]   ;;  %s1003_s2 = inlined_call_operand.vmem [shape: f32[2,20,20], index: 2, kind: output, shape index: {}]  }
   0x1   :  { %9 = vsyncpa [#allocation3 + $0x1], 0 }
   0x2   :  { %10 = vsyncpa [#allocation5], 0 }
   0x3   :  { %12 = vsyncpa [#allocation5 + $0x1], 0  ;;  %s763_s9 = smov 0   ;;  %s765_s10 = smov 0  }
   0x4   :  { %s767_s11 = smov 0   ;;  %s769_s12 = smov 0  }
   0x5   :  { %s771_s13 = smov 0   ;;  %s773_s14 = smov 0  }
   0x6   :  { %s775_s15 = smov 0   ;;  %s777_s16 = smov 0  }
   0x7 LB: > { %s473_s17 = sadd.s32 4294967295, %s737_s16   ;;  %s27_s18 = sadd.s32 1, %s729_s14  ;;  %s737_s16 = sphi %s777_s16, %s18_s16   ;;  %s733_s15 = sphi %s775_s15, %s1017_s15   ;;  %s729_s14 = sphi %s773_s14, %s1016_s14   ;;  %s725_s13 = sphi %s771_s13, %s1015_s13   ;;  %s721_s12 = sphi %s769_s12, %s1014_s12   ;;  %s717_s11 = sphi %s767_s11, %s1013_s11   ;;  %s713_s10 = sphi %s765_s10, %s1012_s10   ;;  %s709_s9 = sphi %s763_s9, %s1011_s9  }
   0x8   : > { %p28_p0 = scmp.ge.s32.totalorder %s27_s18, 2  ;;  %s30_s19 = sadd.s32 1, %s733_s15 }
   0x9   : > { %s475_s20 = sshll.u32 %s733_s15, 1  ;;  %s45_s21 = sadd.s32 1, %s717_s11 }
   0xa   : > { %s1019_s18 = smov (%p28_p0, %s27_s18), 0  ;;  %s1021_s19 = smov (!%p28_p0, %s30_s19), %s733_s15 }
   0xb   : > { %s35_s22 = sadd.s32 %s729_s14, %s475_s20  ;;  %p52_p1 = scmp.ne.s32.totalorder %s717_s11, %s713_s10 }
   0xc   : > { %p32_p2 = scmp.ge.s32.totalorder %s1021_s19, 2  ;;  %p36_p3 = scmp.lt.s32.totalorder %s35_s22, 3 }
   0xd   : > { %p53_p4 = scmp.eq.s32.totalorder %s737_s16, 0  ;;  %p58_p5 = scmp.ne.s32.totalorder %s713_s10, %s709_s9 }
   0xe   : > { %s1023_s19 = smov (%p32_p2, %s1021_s19), 0  ;;  %s1025_s22 = smov (!%p36_p3, %s35_s22), 3 }
   0xf   : > { %s476_s23 = sshll.u32 %s1023_s19, 1  ;;  %p819_p6 = por %p53_p4, %p52_p1 }
  0x10   : > { %s39_s25 = sadd.s32 %s476_s23, %s1019_s18  ;;  %p59_p7 = scmp.eq.s32.totalorder %s473_s17, 0 }
  0x11   : > { %p40_p8 = scmp.lt.s32.totalorder %s39_s25, 3  ;;  %p535_p10 = scmp.lt.s32.totalorder %s737_s16, 4 }
  0x12   : > { %p824_p9 = por %p59_p7, %p58_p5  ;;  %s830_s27 = sand.u32 1, %s717_s11  }
  0x13   : > { %s1027_s25 = smov (!%p40_p8, %s39_s25), 3  ;;  %s482_s28 = sshll.u32 %s1025_s22, 7 }
  0x14   : > { %s1006_s26 = scalar_select %p824_p9, 1, 0 }
  0x15   : > { %s42_s29 = ssub.s32 %s1025_s22, %s1027_s25  ;;  %s520_s30 = smul.u32 24, %s830_s27 }
  0x16   : > { %p43_p11 = scmp.eq.s32.totalorder %s42_s29, 0  ;;  %s840_s5 = scalar_lea.hbm %s1001_s0, %s482_s28 }
  0x17   : > { %p844_p12 = pnand %p535_p10, %p819_p6  ;;  %s146_s8 = scalar_lea.vmem [#allocation2], %s520_s30 }
  0x18   : > { %s849_s7 = scalar_select %p43_p11, %s717_s11, %s45_s21  }
  0x19   : > { %s156_s9 = sshll.u32 %s146_s8, 4  ;;  %s143_s17 = scalar_lea.sflag [#allocation3], %s830_s27  ;;  %s853_s9 = int_to_ptr.vmem [resolvable:$true] %s156_s9 }
  0x1a   : > { %s607_s20 = scalar_lea.hbm %s840_s5, 384  ;;  %p609_p1 = pneg %p844_p12 }
  0x1b   : > { %p608_p0 = scmp.ne.s32.totalorder %s840_s5, %s607_s20  ;;  %s612_s21 = scalar_lea.hbm %s1001_s0, 1536 }
  0x1c   : > { %p613_p4 = scmp.lt.u32.totalorder %s840_s5, %s1001_s0  ;;  %p614_p5 = scmp.lt.u32.totalorder %s612_s21, %s607_s20 }
  0x1d   : > { %p610_p2 = pnand %p609_p1, %p608_p0  ;;  %p616_p7 = scmp.lt.u32.totalorder %s607_s20, %s840_s5 }
  0x1e   : > { %p615_p6 = por %p614_p5, %p613_p4 }
  0x1f   : > { %p611_p3 = pneg %p610_p2 }
  0x20   : > { %p617_p8 = por %p616_p7, %p615_p6 }
  0x22   : > { %p618_p10 = pnand %p617_p8, %p611_p3 }
  0x24   : > { %621 = shalt.err (!%p618_p10)
}
  0x25   : > { %s622_s3 = scalar_lea.vmem %s853_s9, 384  ;;  %s739_s4 = smov [#allocation2]  }
  0x26   : > { %p623_p11 = scmp.ne.s32.totalorder %s853_s9, %s622_s3  ;;  %s627_s8 = sshll.u32 %s739_s4, 4  ;;  %s628_s8 = int_to_ptr.vmem [resolvable:$false] %s627_s8 }
  0x27   : > { %s629_s23 = scalar_lea.vmem %s628_s8, 768  ;;  %p630_p13 = scmp.lt.s32.totalorder %s853_s9, %s628_s8 }
  0x28   : > { %p625_p0 = pnand %p623_p11, %p609_p1  ;;  %p631_p4 = scmp.lt.s32.totalorder %s629_s23, %s622_s3 }
  0x2a   : > { %p626_p2 = pneg %p625_p0  ;;  %p632_p5 = por %p631_p4, %p630_p13 }
  0x2c   : > { %p633_p6 = pnand %p632_p5, %p626_p2 }
  0x2e   : > { %636 = shalt.err (!%p633_p6)
}
  0x2f   : > { %s740_s20 = smov 512   ;;  %s741_s24 = smov 128  }
  0x30   : > { %s742_s21 = smov 8   ;;  %p188_p13 = scmp.lt.s32.totalorder %s737_s16, 5 }
  0x31   : > { %531 = dma.hbm_to_vmem [thread:$0]  (!%p844_p12), %s840_s5, 384, %s853_s9, %s143_s17, %s740_s20, %s741_s24, %s742_s21  }
  0x32   : > { %s893_s3 = scalar_lea.hbm %s1002_s1, %s482_s28  ;;  %p1008_p3 = scmp.ge.s32.totalorder %s737_s16, 1 }
  0x33   : > { %s170_s8 = scalar_lea.vmem [#allocation4], %s520_s30  ;;  %s167_s22 = scalar_lea.sflag [#allocation5], %s830_s27 }
  0x34   : > { %p897_p7 = pnand %p1008_p3, %p188_p13  ;;  %s180_s23 = sshll.u32 %s170_s8, 4  ;;  %s903_s23 = int_to_ptr.vmem [resolvable:$true] %s180_s23 }
  0x35   : > { %s637_s5 = scalar_lea.hbm %s893_s3, 384  ;;  %s642_s17 = scalar_lea.hbm %s1002_s1, 1536 }
  0x36   : > { %p638_p8 = scmp.ne.s32.totalorder %s893_s3, %s637_s5  ;;  %p643_p0 = scmp.lt.u32.totalorder %s893_s3, %s1002_s1 }
  0x37   : > { %p644_p2 = scmp.lt.u32.totalorder %s642_s17, %s637_s5  ;;  %p646_p5 = scmp.lt.u32.totalorder %s637_s5, %s893_s3 }
  0x38   : > { %p640_p10 = pnand %p638_p8, %p609_p1 }
  0x39   : > { %p645_p4 = por %p644_p2, %p643_p0 }
  0x3a   : > { %p641_p11 = pneg %p640_p10 }
  0x3b   : > { %p647_p6 = por %p646_p5, %p645_p4 }
  0x3d   : > { %p648_p13 = pnand %p647_p6, %p641_p11 }
  0x3f   : > { %651 = shalt.err (!%p648_p13)
}
  0x40   : > { %s652_s30 = scalar_lea.vmem %s903_s23, 384  ;;  %s743_s8 = smov [#allocation4]  }
  0x41   : > { %p653_p3 = scmp.ne.s32.totalorder %s903_s23, %s652_s30  ;;  %s657_s28 = sshll.u32 %s743_s8, 4  ;;  %s658_s28 = int_to_ptr.vmem [resolvable:$false] %s657_s28 }
  0x42   : > { %s659_s9 = scalar_lea.vmem %s658_s28, 768  ;;  %p660_p9 = scmp.lt.s32.totalorder %s903_s23, %s658_s28 }
  0x43   : > { %p655_p8 = pnand %p653_p3, %p609_p1  ;;  %p661_p0 = scmp.lt.s32.totalorder %s659_s9, %s652_s30 }
  0x45   : > { %p656_p10 = pneg %p655_p8  ;;  %p662_p2 = por %p661_p0, %p660_p9 }
  0x47   : > { %p663_p4 = pnand %p662_p2, %p656_p10 }
  0x49   : > { %666 = shalt.err (!%p663_p4)
}
  0x4a   : > { %534 = dma.hbm_to_vmem [thread:$0]  (!%p844_p12), %s893_s3, 384, %s903_s23, %s167_s22, %s740_s20, %s741_s24, %s742_s21  }
  0x4b   : > { %192 = sbr.rel (%p897_p7) target bundleno = 336 (0x150), region = 28  ;;  %s194_s5 = sand.u32 (!%p897_p7), 1, %s713_s10  }
  0x4c   : > { %s522_s17 = smul.u32 (!%p897_p7), 24, %s194_s5  ;;  %s195_s25 = scalar_lea.sflag (!%p897_p7), [#allocation3], %s194_s5 }
  0x4d   : > { %p1010_p9 = scmp.ne.s32.totalorder (!%p897_p7), %s1006_s26, 0 }
  0x4e   : > { %s937_s29 = scalar_lea.vmem (!%p897_p7), [#allocation2], %s522_s17 }
  0x52   : > { %700 = dma.done.wait (%p1010_p9), %s195_s25, 384  }
  0x53   : > { %702 = vsyncadd (%p1010_p9), %s195_s25, 4294966912  ;;  %s204_s27 = scalar_lea.sflag [#allocation5], %s194_s5  ;;  %s943_s6 = scalar_lea.vmem [#allocation4], %s522_s17 }
  0x54   : > { %704 = dma.done.wait (%p1010_p9), %s204_s27, 384  }
  0x55   : > { %706 = vsyncadd (%p1010_p9), %s204_s27, 4294966912  ;;  %p241_p12 = scmp.lt.s32.totalorder %s725_s13, 1  ;;  %p487_p1 = scmp.ne.s32.totalorder %s721_s12, 0 }
  0x56   : > { %vm250_vm0 = vcmask (!%p487_p1), 162816   ;;  %vm253_vm1 = vcmask (!%p487_p1), 158720   ;;  %v744_v0 = vmov (!%p487_p1), 0.0  }
  0x57   : > { %s242_s20 = scalar_select %p241_p12, %s725_s13, 1 }
  0x58   : > { %249 = sbr.rel (%p487_p1) target bundleno = 95 (0x5f), region = 40 }
  0x59   : > { %s523_s24 = smul.u32 24, %s242_s20 }
  0x5b   : > { %s954_s4 = scalar_lea.vmem %s1003_s2, %s523_s24 }
  0x5c   : > { %251 = vst.msk [vmem:[%s954_s4] sm:$0xff] (!%p487_p1), %vm250_vm0, %v744_v0  ;;  %252 = vst.msk [vmem:[%s954_s4 + $0x8] sm:$0xff] (!%p487_p1), %vm250_vm0, %v744_v0 }
  0x5d   : > { %254 = vst.msk [vmem:[%s954_s4 + $0x10] sm:$0xf] (!%p487_p1), %vm253_vm1, %v744_v0 }
  0x5f PF: > { %s488_s26 = sshll.u32 %s725_s13, 1  ;;  %v263_v1 = vlaneseq  ;;  %v745_v2 = vmov 0.0|0.0   ;;  %v255_v3 = vld [vmem:[%s937_s29] sm:$0xff]  ;;  %vm746_vm2 = vmmov 0   ;;  %v747_v5 = vmov 0.0   ;;  %v256_v6 = vld [vmem:[%s937_s29 + $0x8] sm:$0xff] }
  0x60   : > { %516 = vmatprep.subr.bf16.mxu1 %v745_v2  ;;  %s262_s23 = sadd.s32 %s721_s12, %s488_s26  ;;  %513 = vmatprep.subr.bf16.mxu0 %v745_v2  ;;  %v258_v7 = vld [vmem:[%s943_s6] sm:$0xff]  ;;  %v259_v8 = vld [vmem:[%s943_s6 + $0x8] sm:$0xff]  ;;  %v260_v18 = vld [vmem:[%s943_s6 + $0x10] sm:$0xf]  ;;  %vm367_vm4 = vcmask 162816   ;;  %vm370_vm5 = vcmask 158720  }
  0x61   : > { %v264_v4 = vand.u32 127, %v263_v1  ;;  %s489_s22 = sshll.u32 %s262_s23, 7  ;;  %507 = vmatprep.mubr.msk.f32.mxu1 %vm746_vm2, %v747_v5  ;;  %504 = vmatprep.mubr.msk.f32.mxu0 %vm746_vm2, %v747_v5  ;;  %v257_v17 = vld [vmem:[%s937_s29 + $0x10] sm:$0xf] }
  0x62   : > { %s266_s13 = ssub.s32 500, %s489_s22 }
  0x63   : > { %v267_v9 = vstv %s266_s13  ;;  %v362_v25 = vld [vmem:[%s954_s4 + $0x8] sm:$0xff]  ;;  %v361_v26 = vld [vmem:[%s954_s4] sm:$0xff] }
  0x64   : > { %vm268_vm3 = vcmp.lt.s32.totalorder %v264_v4, %v267_v9  ;;  %v363_v33 = vld [vmem:[%s954_s4 + $0x10] sm:$0xf] }
  0x65   : > { %v269_v10 = vsel %vm268_vm3, %v255_v3, 0.0  ;;  %v270_v11 = vsel %vm268_vm3, %v256_v6, 0.0  ;;  %v272_v12 = vsel %vm268_vm3, %v258_v7, 0.0  ;;  %v273_v13 = vsel %vm268_vm3, %v259_v8, 0.0 }
  0x66   : > { %v278_v14 = vsub.f32 %v269_v10, %v272_v12  ;;  %v279_v15 = vsub.f32 %v270_v11, %v273_v13  ;;  %v271_v19 = vsel %vm268_vm3, %v257_v17, 0.0  ;;  %v274_v20 = vsel %vm268_vm3, %v260_v18, 0.0 }
  0x67   : > { %v280_v21 = vsub.f32 %v271_v19, %v274_v20  ;;  %v276_v22 = vadd.f32 %v273_v13, %v270_v11  ;;  %v275_v23 = vadd.f32 %v272_v12, %v269_v10  ;;  %v277_v24 = vadd.f32 %v274_v20, %v271_v19 }
  0x68   : > { %v514_v16 = vpack.c.bf16 %v279_v15, %v278_v14 }
  0x6a   : > { %518 = vmatpush3.bf16.xpose.msra.mxu1 %v514_v16  ;;  %515 = vmatpush3.bf16.xpose.msra.mxu0 %v514_v16 }
  0x6b   : > { %517 = vmatprep.subr.mxu1 %v747_v5  ;;  %502 = vmatprep.subr.mxu0 %v747_v5 }
  0x72   : > { %519 = vmatpush3.xpose.msra.mxu1 %v280_v21  ;;  %503 = vmatpush3.xpose.msra.mxu0 %v280_v21 }
  0x75   : > { %508 = vmatmul.mubr.f32.vlgmr.msra.gmra.mrb[0].mxu1 %v276_v22  ;;  %505 = vmatmul.mubr.f32.vlgmr.msra.gmra.mrb[0].mxu0 %v275_v23 }
  0x76   : > { %510 = vmatprep.mubr.msk.f32.mxu1 %vm746_vm2, %v747_v5 }
  0x79   : > { %511 = vmatmul.mubr.f32.gmra.mrb[2].mxu1 %v277_v24 }
 0x148   : > { %v352_v27 = vpop.f32.mrb[0].mxu1  ;;  %v347_v28 = vpop.f32.mrb[0].mxu0 }
 0x149   : > { %v365_v29 = vadd.f32 %v362_v25, %v352_v27  ;;  %v509_v30 = vpop.f32.mrb[1].mxu1  ;;  %v364_v31 = vadd.f32 %v361_v26, %v347_v28  ;;  %v506_v32 = vpop.f32.mrb[1].mxu0 }
 0x14b   : > { %369 = vst.msk [vmem:[%s954_s4 + $0x8] sm:$0xff] %vm367_vm4, %v365_v29  ;;  %368 = vst.msk [vmem:[%s954_s4] sm:$0xff] %vm367_vm4, %v364_v31 }
 0x14c   : > { %v357_v34 = vpop.f32.mrb[2].mxu1 }
 0x14d   : > { %v366_v35 = vadd.f32 %v363_v33, %v357_v34  ;;  %v512_v36 = vpop.f32.mrb[3].mxu1 }
 0x14f   : > { %371 = vst.msk [vmem:[%s954_s4 + $0x10] sm:$0xf] %vm370_vm5, %v366_v35 }
 0x150 PF: > { %s18_s16 = sadd.s32 1, %s737_s16   ;;  %s1011_s9 = smov %s713_s10 }
 0x151   : > { %p15_p7 = scmp.ge.s32.totalorder %s18_s16, 6   ;;  %s1012_s10 = smov %s717_s11 }
 0x152   : > { %s1013_s11 = smov %s849_s7  ;;  %s1014_s12 = smov %s729_s14 }
 0x153   : > { %s1015_s13 = smov %s733_s15  ;;  %s1016_s14 = smov %s1019_s18 }
 0x154   : > { %s1017_s15 = smov %s1023_s19  ;;  %17 = sbr.rel (!%p15_p7) target bundleno = 7 (0x7), region = 85 }
 0x15b   :  { %393 = vsyncpa [#allocation3], 1 }
 0x15c   :  { %395 = vsyncpa [#allocation3 + $0x1], 1 }
 0x15d   :  { %396 = vsyncpa [#allocation5], 1 }
 0x15e   :  { %398 = vsyncpa [#allocation5 + $0x1], 1 }

</bundles_post_ra>
